<compile_context>
chip_gen: v6e
topology: v6e:2x2x1
jax: 0.10.0
libtpu: 0.0.40
codegen_flags: <defaults>
</compile_context>

<pallas_src>
import jax
import jax.numpy as jnp
from jax.experimental import pallas as pl
from jax.experimental.pallas import tpu as pltpu

HIDDEN = 20   # Decoder_2 hidden width (Linear(2, 20))
BIAS = 0.01   # nn.Linear biases are filled with 0.01 by init_weights


def _round_up(x, m):
    return ((x + m - 1) // m) * m


def _make_decoder2_kernel(bias1, bias2):
    def kernel(xT_ref, w1T_ref, w2T_ref, o_ref):
        xT = xT_ref[...]                        # [2, TB]   (batch on lanes)
        w1T = w1T_ref[...]                      # [20, 2]

        # First layer (K = 2): two broadcast FMAs on the VPU, no MXU push/pop.
        h = w1T[:, 0:1] * xT[0:1, :] + w1T[:, 1:2] * xT[1:2, :] + bias1
        h = jnp.maximum(h, 0.0)                 # [20, TB]

        # Second layer: [N, 20] @ [20, TB] on the MXU, f32 accumulation.
        y = jnp.dot(w2T_ref[...], h, preferred_element_type=jnp.float32) + bias2
        y = jnp.maximum(y, 0.0)                 # [N, TB]

        # In-kernel transpose to the consumer's [B, N] layout; the
        # [N,TB]->[TB,N] XLU transpose hides under the output DMA and avoids a
        # second HBM pass in the wrapper.
        o_ref[...] = y.T.astype(o_ref.dtype)
    return kernel


def decoder2_forward(x, w1, w2, *, bias1=BIAS, bias2=BIAS, tile_b=None):
    """Decoder_2 forward.  x: [B, 2], w1: [2, 20], w2: [20, N] -> [B, N]."""
    B, d_in = x.shape
    hidden = w1.shape[1]
    num_inputs = w2.shape[1]

    if tile_b is None:
        # One big lane-dense tile for small/moderate batches (zero extra
        # pipeline steps on single-TC v5e/v6e); cap at 16K rows so very large
        # batches still split into >=2 "parallel" steps for dual-TC v7x while
        # VMEM per step stays ~10 MiB.
        tile_b = min(16384, _round_up(B, 128))
    else:
        # Guard the (8,128) lane rule for user-supplied tile sizes.
        tile_b = min(_round_up(tile_b, 128), 16384)

    n_tiles = pl.cdiv(B, tile_b)
    B_pad = n_tiles * tile_b

    # Batch-on-lanes: put the batch dim on the 128-lane (last) axis.  Do NOT
    # feed x as [B, 2]: a (tile_b, 2) block pads 2 -> 128 lanes (64x blow-up).
    xT = jnp.transpose(x)                            # [2, B]
    if B_pad != B:                                   # pad only when needed
        xT = jnp.pad(xT, ((0, 0), (0, B_pad - B)))   # [2, B_pad]
    w1T = jnp.transpose(w1)                          # [20, 2]
    w2T = jnp.transpose(w2)                          # [N, 20]

    out = pl.pallas_call(
        _make_decoder2_kernel(float(bias1), float(bias2)),
        out_shape=jax.ShapeDtypeStruct((B_pad, num_inputs), x.dtype),
        grid_spec=pltpu.PrefetchScalarGridSpec(
            num_scalar_prefetch=0,
            grid=(n_tiles,),
            in_specs=[
                pl.BlockSpec((d_in, tile_b), lambda i: (0, i)),        # x^T tile
                pl.BlockSpec((hidden, d_in), lambda i: (0, 0)),        # W1^T (tiny, resident)
                pl.BlockSpec((num_inputs, hidden), lambda i: (0, 0)),  # W2^T (tiny, resident)
            ],
            out_specs=pl.BlockSpec((tile_b, num_inputs), lambda i: (i, 0)),
        ),
        compiler_params=pltpu.CompilerParams(
            dimension_semantics=("parallel",),
            vmem_limit_bytes=32 * 1024 * 1024),
    )(xT, w1T, w2T)

    # Padded tail rows (if any) contain relu(bias) garbage; slice them off.
    return out if B_pad == B else out[:B]


def xavier_uniform(key, fan_in, fan_out, dtype=jnp.float32):
    # matches torch.nn.init.xavier_uniform_: bound = sqrt(6 / (fan_in + fan_out))
    bound = (6.0 / (fan_in + fan_out)) ** 0.5
    return jax.random.uniform(key, (fan_in, fan_out), dtype=dtype,
                              minval=-bound, maxval=bound)


def make_params(key, num_inputs):
    k1, k2 = jax.random.split(key)
    w1 = xavier_uniform(k1, 2, HIDDEN)                  # Linear(2, 20) weight^T
    b1 = jnp.full((1, HIDDEN), BIAS, jnp.float32)       # bias filled with 0.01
    w2 = xavier_uniform(k2, HIDDEN, num_inputs)         # Linear(20, N) weight^T
    b2 = jnp.full((1, num_inputs), BIAS, jnp.float32)
    return w1, b1, w2, b2


def decoder2_reference(x, w1, b1, w2, b2):
    h = jnp.maximum(x @ w1 + b1, 0.0)
    return jnp.maximum(h @ w2 + b2, 0.0)


if __name__ == "__main__":
    key = jax.random.PRNGKey(0)
    k_x, k_p = jax.random.split(key)

    batch = 200          # small; exercises the ragged tail path (B_pad = 256)
    num_inputs = 32      # num_inputs for Decoder_2

    x = jax.random.normal(k_x, (batch, 2), dtype=jnp.float32)
    w1, b1, w2, b2 = make_params(k_p, num_inputs)

    out = decoder2_forward(x, w1, w2)        # biases folded as 0.01 constants
    out = jax.block_until_ready(out)

    ref = decoder2_reference(x, w1, b1, w2, b2)
    assert out.shape == (batch, num_inputs)
    assert jnp.allclose(out, ref, atol=1e-5, rtol=1e-5), "mismatch vs. JAX reference"

    print("KERNEL_OK")
</pallas_src>

<mosaic_0001>
module attributes {stable_mosaic.version = 11 : i64} {
  func.func @kernel(%arg0: i32, %arg1: memref<2x256xf32, #tpu.memory_space<vmem>>, %arg2: memref<20x2xf32, #tpu.memory_space<vmem>>, %arg3: memref<32x20xf32, #tpu.memory_space<vmem>>, %arg4: memref<256x32xf32, #tpu.memory_space<vmem>>) attributes {dimension_semantics = [#tpu.dimension_semantics<parallel>], iteration_bounds = array<i64: 1>, scalar_prefetch = 0 : i64, scratch_operands = 0 : i64, tpu.core_type = #tpu.core_type<tc>, window_params = [{transform_indices = @transform_0, window_bounds = array<i64: 2, 256>}, {pipeline_mode = #tpu.pipeline_mode<synchronous>, transform_indices = @transform_1, window_bounds = array<i64: 20, 2>}, {pipeline_mode = #tpu.pipeline_mode<synchronous>, transform_indices = @transform_2, window_bounds = array<i64: 32, 20>}, {transform_indices = @transform_3, window_bounds = array<i64: 256, 32>}]} {
    %c0 = arith.constant 0 : index
    %c0_0 = arith.constant 0 : index
    %0 = vector.load %arg1[%c0, %c0_0] : memref<2x256xf32, #tpu.memory_space<vmem>>, vector<2x256xf32>
    %c0_1 = arith.constant 0 : index
    %c0_2 = arith.constant 0 : index
    %1 = vector.load %arg2[%c0_1, %c0_2] : memref<20x2xf32, #tpu.memory_space<vmem>>, vector<20x2xf32>
    %2 = vector.extract_strided_slice %1 {offsets = [0, 0], sizes = [20, 1], strides = [1, 1]} : vector<20x2xf32> to vector<20x1xf32>
    %3 = vector.extract_strided_slice %0 {offsets = [0, 0], sizes = [1, 256], strides = [1, 1]} : vector<2x256xf32> to vector<1x256xf32>
    %4 = vector.broadcast %2 : vector<20x1xf32> to vector<20x256xf32>
    %5 = vector.broadcast %3 : vector<1x256xf32> to vector<20x256xf32>
    %6 = arith.mulf %4, %5 : vector<20x256xf32>
    %7 = vector.extract_strided_slice %1 {offsets = [0, 1], sizes = [20, 1], strides = [1, 1]} : vector<20x2xf32> to vector<20x1xf32>
    %8 = vector.extract_strided_slice %0 {offsets = [1, 0], sizes = [1, 256], strides = [1, 1]} : vector<2x256xf32> to vector<1x256xf32>
    %9 = vector.broadcast %7 : vector<20x1xf32> to vector<20x256xf32>
    %10 = vector.broadcast %8 : vector<1x256xf32> to vector<20x256xf32>
    %11 = arith.mulf %9, %10 : vector<20x256xf32>
    %12 = arith.addf %6, %11 : vector<20x256xf32>
    %cst = arith.constant 0.00999999977 : f32
    %13 = vector.broadcast %cst : f32 to vector<20x256xf32>
    %14 = arith.addf %12, %13 : vector<20x256xf32>
    %cst_3 = arith.constant 0.000000e+00 : f32
    %15 = vector.broadcast %cst_3 : f32 to vector<20x256xf32>
    %16 = arith.maximumf %14, %15 : vector<20x256xf32>
    %c0_4 = arith.constant 0 : index
    %c0_5 = arith.constant 0 : index
    %17 = vector.load %arg3[%c0_4, %c0_5] : memref<32x20xf32, #tpu.memory_space<vmem>>, vector<32x20xf32>
    %cst_6 = arith.constant dense<0.000000e+00> : vector<32x256xf32>
    %18 = tpu.matmul %17, %16, %cst_6 {dimension_numbers = #tpu.dot_dimension_numbers<[1], [0], [0], [1], [0, 0, 1, 1], [], []>} : vector<32x20xf32>, vector<20x256xf32>, vector<32x256xf32> -> vector<32x256xf32>
    %cst_7 = arith.constant 0.00999999977 : f32
    %19 = vector.broadcast %cst_7 : f32 to vector<32x256xf32>
    %20 = arith.addf %18, %19 : vector<32x256xf32>
    %cst_8 = arith.constant 0.000000e+00 : f32
    %21 = vector.broadcast %cst_8 : f32 to vector<32x256xf32>
    %22 = arith.maximumf %20, %21 : vector<32x256xf32>
    %23 = tpu.transpose %22, [1, 0] : vector<32x256xf32> -> vector<256x32xf32>
    %c0_9 = arith.constant 0 : index
    %c0_10 = arith.constant 0 : index
    %24 = vector.load %arg4[%c0_9, %c0_10] : memref<256x32xf32, #tpu.memory_space<vmem>>, vector<256x32xf32>
    tpu.vector_store %arg4[%c0_9, %c0_10], %23 {strides = array<i32>} : memref<256x32xf32, #tpu.memory_space<vmem>>, vector<256x32xf32>,
    return
  }
  func.func @transform_0(%arg0: i32) -> (i32, i32) {
    %c0_i32 = arith.constant 0 : i32
    %c0_i32_0 = arith.constant 0 : i32
    return %c0_i32, %arg0 : i32, i32
  }
  func.func @transform_1(%arg0: i32) -> (i32, i32) {
    %c0_i32 = arith.constant 0 : i32
    %c0_i32_0 = arith.constant 0 : i32
    %c0_i32_1 = arith.constant 0 : i32
    return %c0_i32, %c0_i32_0 : i32, i32
  }
  func.func @transform_2(%arg0: i32) -> (i32, i32) {
    %c0_i32 = arith.constant 0 : i32
    %c0_i32_0 = arith.constant 0 : i32
    %c0_i32_1 = arith.constant 0 : i32
    return %c0_i32, %c0_i32_0 : i32, i32
  }
  func.func @transform_3(%arg0: i32) -> (i32, i32) {
    %c0_i32 = arith.constant 0 : i32
    %c0_i32_0 = arith.constant 0 : i32
    return %arg0, %c0_i32 : i32, i32
  }
}

</mosaic_0001>

<bundles_post_ra>
// kernel: tpu_custom_call.1
= control target key start
LH: loop header
LB: loop body
LE: loop exit
PB: predicated region body
PF: predicated region fallthrough
CT: control target
= control target key end

     0   :  { %v354_v0 = vmov 0   ;;  %v355_v3 = vmov 1   ;;  %v356_v5 = vmov 0.0   ;;  %v34_v6 = vlaneseq  ;;  %s533_s1 = inlined_call_operand.vmem [shape: f32[20,2], index: 1, kind: input, shape index: {}]   ;;  %s534_s0 = inlined_call_operand.vmem [shape: f32[2,256], index: 0, kind: input, shape index: {}]   ;;  %s535_s2 = inlined_call_operand.vmem [shape: f32[32,20], index: 2, kind: input, shape index: {}]   ;;  %s536_s3 = inlined_call_operand.vmem [shape: f32[256,32], index: 3, kind: output, shape index: {}]  }
   0x1   :  { %351 = vset.pattern.permute.xlu1 %v354_v0  ;;  %349 = vset.pattern.permute.xlu0 %v354_v0  ;;  %v17_v1 = vld [vmem:[%s533_s1 + $0x10] sm:$0xf]  ;;  %v16_v2 = vld [vmem:[%s533_s1 + $0x8] sm:$0xff]  ;;  %v15_v4 = vld [vmem:[%s533_s1] sm:$0xff]  ;;  %vm129_vm0 = vcmask 1043456   ;;  %vm116_vm1 = vcmask 162816  }
   0x2   :  { %30 = vperm.xlu0 %349, %v17_v1   ;;  %25 = vperm.xlu1 %351, %v16_v2   ;;  %v35_v7 = vshrl.u32 %v34_v6, 7  ;;  %v14_v10 = vld [vmem:[%s534_s0] sm:$0xf]  ;;  %v114_v58 = vld [vmem:[%s535_s2 + $0x10] sm:$0xff]  ;;  %v113_v59 = vld [vmem:[%s535_s2 + $0x8] sm:$0xff]  ;;  %vm297_vm2 = vcmask 261120  }
   0x3   :  { %200 = vmatprep.mubr.f32.mxu0 %v356_v5  ;;  %212 = vmatprep.mubr.f32.mxu1 %v356_v5  ;;  %v112_v57 = vld [vmem:[%s535_s2] sm:$0xff]  ;;  %v115_v60 = vld [vmem:[%s535_s2 + $0x18] sm:$0xff] }
   0x4   :  { %v36_v8 = vsub.s32 0, %v35_v7  ;;  %v40_v9 = vsub.s32 2, %v35_v7  ;;  %v72_v11 = vsub.s32 1, %v35_v7  ;;  %v76_v12 = vsub.s32 3, %v35_v7 }
   0x6   :  { %350 = vset.pattern.permute.xlu0 %v355_v3  ;;  %352 = vset.pattern.permute.xlu1 %v355_v3  ;;  %v37_v13 = vrot.slane %v14_v10, %v36_v8  ;;  %v41_v14 = vrot.slane %v14_v10, %v40_v9  ;;  %v73_v15 = vrot.slane %v14_v10, %v72_v11 }
   0x7   :  { %67 = vperm.xlu0 %350, %v17_v1   ;;  %63 = vperm.xlu1 %352, %v16_v2   ;;  %v77_v16 = vrot.slane %v14_v10, %v76_v12 }
   0x8   :  { %v47_v19 = vrot.slane %v37_v13, %v36_v8  ;;  %v51_v20 = vrot.slane %v41_v14, %v36_v8  ;;  %v83_v21 = vrot.slane %v73_v15, %v72_v11 }
   0x9   :  { %v87_v22 = vrot.slane %v77_v16, %v72_v11 }
   0xb   :  { %353 = vset.pattern.permute.xlu1 %v354_v0  ;;  %59 = vperm.xlu0 %350, %v15_v4  }
   0xc   :  { %20 = vperm.xlu1 %353, %v15_v4  }
  0x7d   :  { %v26_v17 = vpop.permute.xlu1 %25  ;;  %v31_v18 = vpop.permute.xlu0 %30 }
  0x7e   :  { %v54_v23 = vmul.f32 %v47_v19, %v26_v17  ;;  %v55_v24 = vmul.f32 %v51_v20, %v26_v17  ;;  %v56_v25 = vmul.f32 %v47_v19, %v31_v18  ;;  %v57_v26 = vmul.f32 %v51_v20, %v31_v18 }
  0x82   :  { %v68_v27 = vpop.permute.xlu0 %67  ;;  %v64_v28 = vpop.permute.xlu1 %63 }
  0x83   :  { %v92_v29 = vmul.f32 %v83_v21, %v68_v27  ;;  %v93_v30 = vmul.f32 %v87_v22, %v68_v27  ;;  %v90_v31 = vmul.f32 %v83_v21, %v64_v28  ;;  %v91_v32 = vmul.f32 %v87_v22, %v64_v28 }
  0x85   :  { %v98_v33 = vadd.f32 %v92_v29, %v56_v25  ;;  %v96_v34 = vadd.f32 %v90_v31, %v54_v23  ;;  %v97_v35 = vadd.f32 %v91_v32, %v55_v24  ;;  %v99_v36 = vadd.f32 %v93_v30, %v57_v26 }
  0x86   :  { %v60_v37 = vpop.permute.xlu0 %59 }
  0x87   :  { %v104_v38 = vadd.f32 0.01, %v98_v33  ;;  %v103_v39 = vadd.f32 0.01, %v97_v35  ;;  %v88_v40 = vmul.f32 %v83_v21, %v60_v37  ;;  %v21_v41 = vpop.permute.xlu1 %20  ;;  %v89_v42 = vmul.f32 %v87_v22, %v60_v37 }
  0x88   :  { %v52_v43 = vmul.f32 %v47_v19, %v21_v41  ;;  %v53_v44 = vmul.f32 %v51_v20, %v21_v41  ;;  %v105_v45 = vadd.f32 0.01, %v99_v36  ;;  %v102_v46 = vadd.f32 0.01, %v96_v34 }
  0x89   :  { %v110_v47 = vmax.f32 %v104_v38, 0.0  ;;  %v109_v53 = vmax.f32 %v103_v39, 0.0 }
  0x8a   :  { %v94_v48 = vadd.f32 %v88_v40, %v52_v43  ;;  %v95_v49 = vadd.f32 %v89_v42, %v53_v44  ;;  %v111_v50 = vmax.f32 %v105_v45, 0.0  ;;  %v108_v54 = vmax.f32 %v102_v46, 0.0 }
  0x8c   :  { %v100_v51 = vadd.f32 0.01, %v94_v48  ;;  %v101_v52 = vadd.f32 0.01, %v95_v49  ;;  %334 = vmatprep.subr.msk.mxu0 %vm129_vm0, %v111_v50  ;;  %340 = vmatprep.subr.msk.mxu1 %vm129_vm0, %v111_v50 }
  0x8d   :  { %335 = vmatpush1.msk.msra.mxu0 %vm129_vm0, %v110_v47  ;;  %343 = vmatpush1.msk.msra.mxu1 %vm129_vm0, %v110_v47 }
  0x8e   :  { %164 = vmatprep.subr.mxu0 %v109_v53  ;;  %341 = vmatprep.subr.mxu1 %v109_v53  ;;  %v107_v55 = vmax.f32 %v101_v52, 0.0  ;;  %v106_v56 = vmax.f32 %v100_v51, 0.0 }
  0x8f   :  { %165 = vmatpush1.msra.mxu0 %v108_v54  ;;  %344 = vmatpush1.msra.mxu1 %v108_v54 }
  0x90   :  { %166 = vmatprep.subr.mxu0 %v107_v55  ;;  %342 = vmatprep.subr.mxu1 %v107_v55 }
  0x91   :  { %167 = vmatpush1.msra.mxu0 %v106_v56  ;;  %345 = vmatpush1.msra.mxu1 %v106_v56 }
  0x92   :  { %336 = vmatmul.mubr.msk.f32.vlgmr.msra.gmra.mxu0 %vm116_vm1, %v112_v57  ;;  %338 = vmatmul.mubr.msk.f32.vlgmr.msra.gmra.mxu1 %vm116_vm1, %v114_v58 }
  0x93   :  { %206 = vmatprep.mubr.f32.mxu0 %v356_v5  ;;  %218 = vmatprep.mubr.f32.mxu1 %v356_v5 }
  0x96   :  { %337 = vmatmul.mubr.msk.f32.gmra.mxu0 %vm116_vm1, %v113_v59  ;;  %339 = vmatmul.mubr.msk.f32.gmra.mxu1 %vm116_vm1, %v115_v60 }
 0x152   :  { %v202_v61 = vpop.f32.mrf.mxu0  ;;  %v214_v62 = vpop.f32.mrf.mxu1 }
 0x153   :  { %v203_v63 = vadd.f32 0.01, %v202_v61  ;;  %v215_v8 = vadd.f32 0.01, %v214_v62 }
 0x154   :  { %v204_v0 = vpop.f32.mrf.mxu0  ;;  %v216_v1 = vpop.f32.mrf.mxu1 }
 0x155   :  { %v225_v2 = vmax.f32 %v203_v63, 0.0  ;;  %v205_v3 = vadd.f32 0.01, %v204_v0  ;;  %v229_v13 = vmax.f32 %v215_v8, 0.0  ;;  %v217_v14 = vadd.f32 0.01, %v216_v1 }
 0x156   :  { %v208_v4 = vpop.f32.mrf.mxu0  ;;  %v220_v5 = vpop.f32.mrf.mxu1 }
 0x157   :  { %v226_v6 = vmax.f32 %v205_v3, 0.0  ;;  %v209_v7 = vadd.f32 0.01, %v208_v4  ;;  %233 = vxpose.xlu1.b32.start [1/4] (short) %v225_v2, 128  ;;  %v221_v15 = vadd.f32 0.01, %v220_v5  ;;  %v230_v17 = vmax.f32 %v217_v14, 0.0 }
 0x158   :  { %v210_v9 = vpop.f32.mrf.mxu0  ;;  %v222_v16 = vpop.f32.mrf.mxu1 }
 0x159   :  { %v227_v10 = vmax.f32 %v209_v7, 0.0  ;;  %v211_v11 = vadd.f32 0.01, %v210_v9  ;;  %265 = vxpose.xlu0.b32.start [1/4] (short) %v226_v6, 128  ;;  %v231_v18 = vmax.f32 %v221_v15, 0.0  ;;  %v223_v19 = vadd.f32 0.01, %v222_v16 }
 0x15b   :  { %v228_v12 = vmax.f32 %v211_v11, 0.0  ;;  %234 = vxpose.xlu1.b32.cont [2/4] (short) %v227_v10, 128  ;;  %v232_v20 = vmax.f32 %v223_v19, 0.0 }
 0x15d   :  { %266 = vxpose.xlu0.b32.cont [2/4] (short) %v228_v12, 128 }
 0x15f   :  { %235 = vxpose.xlu1.b32.cont [3/4] (short) %v229_v13, 128 }
 0x161   :  { %267 = vxpose.xlu0.b32.cont [3/4] (short) %v230_v17, 128 }
 0x163   :  { %236 = vxpose.xlu1.b32.end [4/4] (short) %v231_v18, 128 }
 0x165   :  { %268 = vxpose.xlu0.b32.end [4/4] (short) %v232_v20, 128 }
 0x1d3   :  { %v249_v21 = vpop.trf.xlu1 }
 0x1d4   :  { %298 = vst.msk [vmem:[%s536_s3] sm:$0xff] %vm297_vm2, %v249_v21 }
 0x1d5   :  { %v281_v22 = vpop.trf.xlu0 }
 0x1d6   :  { %314 = vst.msk [vmem:[%s536_s3 + $0x80] sm:$0xff] %vm297_vm2, %v281_v22 }
 0x1d7   :  { %v250_v23 = vpop.trf.xlu1 }
 0x1d8   :  { %299 = vst.msk [vmem:[%s536_s3 + $0x8] sm:$0xff] %vm297_vm2, %v250_v23 }
 0x1d9   :  { %v282_v24 = vpop.trf.xlu0 }
 0x1da   :  { %315 = vst.msk [vmem:[%s536_s3 + $0x88] sm:$0xff] %vm297_vm2, %v282_v24 }
 0x1db   :  { %v251_v25 = vpop.trf.xlu1 }
 0x1dc   :  { %300 = vst.msk [vmem:[%s536_s3 + $0x10] sm:$0xff] %vm297_vm2, %v251_v25 }
 0x1dd   :  { %v283_v26 = vpop.trf.xlu0 }
 0x1de   :  { %316 = vst.msk [vmem:[%s536_s3 + $0x90] sm:$0xff] %vm297_vm2, %v283_v26 }
 0x1df   :  { %v252_v27 = vpop.trf.xlu1 }
 0x1e0   :  { %301 = vst.msk [vmem:[%s536_s3 + $0x18] sm:$0xff] %vm297_vm2, %v252_v27 }
 0x1e1   :  { %v284_v28 = vpop.trf.xlu0 }
 0x1e2   :  { %317 = vst.msk [vmem:[%s536_s3 + $0x98] sm:$0xff] %vm297_vm2, %v284_v28 }
 0x1e3   :  { %v253_v29 = vpop.trf.xlu1 }
 0x1e4   :  { %302 = vst.msk [vmem:[%s536_s3 + $0x20] sm:$0xff] %vm297_vm2, %v253_v29 }
 0x1e5   :  { %v285_v30 = vpop.trf.xlu0 }
 0x1e6   :  { %318 = vst.msk [vmem:[%s536_s3 + $0xa0] sm:$0xff] %vm297_vm2, %v285_v30 }
 0x1e7   :  { %v254_v31 = vpop.trf.xlu1 }
 0x1e8   :  { %303 = vst.msk [vmem:[%s536_s3 + $0x28] sm:$0xff] %vm297_vm2, %v254_v31 }
 0x1e9   :  { %v286_v32 = vpop.trf.xlu0 }
 0x1ea   :  { %319 = vst.msk [vmem:[%s536_s3 + $0xa8] sm:$0xff] %vm297_vm2, %v286_v32 }
 0x1eb   :  { %v255_v33 = vpop.trf.xlu1 }
 0x1ec   :  { %304 = vst.msk [vmem:[%s536_s3 + $0x30] sm:$0xff] %vm297_vm2, %v255_v33 }
 0x1ed   :  { %v287_v34 = vpop.trf.xlu0 }
 0x1ee   :  { %320 = vst.msk [vmem:[%s536_s3 + $0xb0] sm:$0xff] %vm297_vm2, %v287_v34 }
 0x1ef   :  { %v256_v35 = vpop.trf.xlu1 }
 0x1f0   :  { %305 = vst.msk [vmem:[%s536_s3 + $0x38] sm:$0xff] %vm297_vm2, %v256_v35 }
 0x1f1   :  { %v288_v36 = vpop.trf.xlu0 }
 0x1f2   :  { %321 = vst.msk [vmem:[%s536_s3 + $0xb8] sm:$0xff] %vm297_vm2, %v288_v36 }
 0x1f3   :  { %v257_v37 = vpop.trf.xlu1 }
 0x1f4   :  { %306 = vst.msk [vmem:[%s536_s3 + $0x40] sm:$0xff] %vm297_vm2, %v257_v37 }
 0x1f5   :  { %v289_v38 = vpop.trf.xlu0 }
 0x1f6   :  { %322 = vst.msk [vmem:[%s536_s3 + $0xc0] sm:$0xff] %vm297_vm2, %v289_v38 }
 0x1f7   :  { %v258_v39 = vpop.trf.xlu1 }
 0x1f8   :  { %307 = vst.msk [vmem:[%s536_s3 + $0x48] sm:$0xff] %vm297_vm2, %v258_v39 }
 0x1f9   :  { %v290_v40 = vpop.trf.xlu0 }
 0x1fa   :  { %323 = vst.msk [vmem:[%s536_s3 + $0xc8] sm:$0xff] %vm297_vm2, %v290_v40 }
 0x1fb   :  { %v259_v41 = vpop.trf.xlu1 }
 0x1fc   :  { %308 = vst.msk [vmem:[%s536_s3 + $0x50] sm:$0xff] %vm297_vm2, %v259_v41 }
 0x1fd   :  { %v291_v42 = vpop.trf.xlu0 }
 0x1fe   :  { %324 = vst.msk [vmem:[%s536_s3 + $0xd0] sm:$0xff] %vm297_vm2, %v291_v42 }
 0x1ff   :  { %v260_v43 = vpop.trf.xlu1 }
 0x200   :  { %309 = vst.msk [vmem:[%s536_s3 + $0x58] sm:$0xff] %vm297_vm2, %v260_v43 }
 0x201   :  { %v292_v44 = vpop.trf.xlu0 }
 0x202   :  { %325 = vst.msk [vmem:[%s536_s3 + $0xd8] sm:$0xff] %vm297_vm2, %v292_v44 }
 0x203   :  { %v261_v45 = vpop.trf.xlu1 }
 0x204   :  { %310 = vst.msk [vmem:[%s536_s3 + $0x60] sm:$0xff] %vm297_vm2, %v261_v45 }
 0x205   :  { %v293_v46 = vpop.trf.xlu0 }
 0x206   :  { %326 = vst.msk [vmem:[%s536_s3 + $0xe0] sm:$0xff] %vm297_vm2, %v293_v46 }
 0x207   :  { %v262_v47 = vpop.trf.xlu1 }
 0x208   :  { %311 = vst.msk [vmem:[%s536_s3 + $0x68] sm:$0xff] %vm297_vm2, %v262_v47 }
 0x209   :  { %v294_v48 = vpop.trf.xlu0 }
 0x20a   :  { %327 = vst.msk [vmem:[%s536_s3 + $0xe8] sm:$0xff] %vm297_vm2, %v294_v48 }
 0x20b   :  { %v263_v49 = vpop.trf.xlu1 }
 0x20c   :  { %312 = vst.msk [vmem:[%s536_s3 + $0x70] sm:$0xff] %vm297_vm2, %v263_v49 }
 0x20d   :  { %v295_v50 = vpop.trf.xlu0 }
 0x20e   :  { %328 = vst.msk [vmem:[%s536_s3 + $0xf0] sm:$0xff] %vm297_vm2, %v295_v50 }
 0x20f   :  { %v264_v51 = vpop.trf.xlu1 }
 0x210   :  { %313 = vst.msk [vmem:[%s536_s3 + $0x78] sm:$0xff] %vm297_vm2, %v264_v51 }
 0x211   :  { %v296_v52 = vpop.trf.xlu0 }
 0x212   :  { %329 = vst.msk [vmem:[%s536_s3 + $0xf8] sm:$0xff] %vm297_vm2, %v296_v52 }

</bundles_post_ra>
